<compile_context>
chip_gen: v7x
topology: tpu7x:2x2x1
jax: 0.10.0
libtpu: 0.0.40
codegen_flags: <defaults>
</compile_context>

<pallas_src>
import jax
import jax.numpy as jnp
from jax import lax
from jax.experimental import pallas as pl
from jax.experimental.pallas import tpu as pltpu  # noqa: F401  (kept for TPU-specific extensions)

EPS = 1e-5  # torch.nn.InstanceNorm2d default eps


def _make_kernel(n_batch, hw, cout, eps):
    """Kernel closure: one fused matmul + per-(sample, channel) InstanceNorm + ReLU."""
    n_phase = 4
    inv_count = 1.0 / float(n_phase * hw)  # Hout*Wout pixels per (sample, channel)

    def kernel(p_ref, w_ref, o_ref):
        # p_ref: (Cin*9,  n_batch*hw) bf16  -- 9-shift patch matrix, batch along the lane axis
        # w_ref: (4*Cout, Cin*9)      bf16  -- block phase-weight matrix (structural zeros)
        # o_ref: (4*Cout, n_batch*hw) bf16  -- normalized + ReLU output, phase-major rows
        y = jnp.dot(w_ref[...], p_ref[...], preferred_element_type=jnp.float32)
        # (4*Cout, n_batch*hw) f32.  Row ordering: row = phase*Cout + co.
        y3 = y.reshape(n_phase, cout, n_batch * hw)  # sublane regroup only; layout-friendly

        for n in range(n_batch):  # unrolled Python loop; N is tiny
            ys = y3[:, :, n * hw:(n + 1) * hw]  # static, 128-aligned lane slice (hw % 128 == 0)
            # InstanceNorm2d(affine=False): stats over all 4*hw output pixels of this sample,
            # biased variance, f32 two-pass (no E[x^2]-mean^2 cancellation risk).
            tot = ys.sum(axis=0)                                   # (Cout, hw)  VALU vreg adds
            mean = tot.sum(axis=-1, keepdims=True) * inv_count     # (Cout, 1)   XLU lane reduce
            cent = ys - mean[None, :, :]
            csq = (cent * cent).sum(axis=0)                        # (Cout, hw)
            var = csq.sum(axis=-1, keepdims=True) * inv_count      # (Cout, 1)
            inv_std = lax.rsqrt(var + eps)                         # EUP
            out = jnp.maximum(cent * inv_std[None, :, :], 0.0)     # ReLU
            o_ref[:, n * hw:(n + 1) * hw] = out.reshape(n_phase * cout, hw).astype(o_ref.dtype)

    return kernel


def sf_conv_transpose2d_block(x, w_t, bias=None, *, stride=2, padding=1, eps=EPS):
    """x: (N, Cin, H, W) NCHW f32; w_t: (Cin, Cout, K, K) PyTorch ConvTranspose2d weight;
    bias: (Cout,) -- accepted for API parity but unused: it is exactly cancelled by the
    affine=False InstanceNorm that follows."""
    del bias
    N, Cin, H, W = x.shape
    _, Cout, K, _ = w_t.shape
    assert stride == 2 and padding == 1 and K == 4, "sub-pixel decomposition specialized to k=4,s=2,p=1"
    HW = H * W
    CIN9 = Cin * 9

    xb = x.astype(jnp.bfloat16)

    # --- 9-shift im2col of the 1-padded input ------------------------------------------
    # For output pixel (2a+ph, 2b+pw) the non-zero deconv taps are
    #   xp[ci, a+dkh+ph, b+dkw+pw] * w_t[ci, co, 3-(2*dkh+ph), 3-(2*dkw+pw)],  dkh,dkw in {0,1}
    # so across all 4 phases only the 9 shifts (sh, sw) in {0,1,2}^2 of xp are ever read.
    xp = jnp.pad(xb, ((0, 0), (0, 0), (1, 1), (1, 1)))         # (N, Cin, H+2, W+2)
    shifts = [xp[:, :, sh:sh + H, sw:sw + W] for sh in range(3) for sw in range(3)]
    P = jnp.stack(shifts, axis=2)                              # (N, Cin, 9, H, W)
    P = P.transpose(1, 2, 0, 3, 4).reshape(CIN9, N * HW)       # row = ci*9 + sh*3 + sw

    # --- block phase-weight matrix (4*Cout, Cin*9) with structural zeros ----------------
    wf = jnp.asarray(w_t, jnp.float32)[:, :, ::-1, ::-1]       # (Cin, Cout, 4, 4), flipped
    rows = []
    for ph in range(2):
        for pw in range(2):
            sub = wf[:, :, ph::2, pw::2]                       # (Cin, Cout, 2, 2) indexed by (dkh, dkw)
            sub = jnp.pad(sub, ((0, 0), (0, 0), (ph, 1 - ph), (pw, 1 - pw)))   # place at (dkh+ph, dkw+pw)
            rows.append(jnp.transpose(sub, (1, 0, 2, 3)).reshape(Cout, CIN9))  # col = ci*9 + sh*3 + sw
    Wblk = jnp.concatenate(rows, axis=0).astype(jnp.bfloat16)  # (4*Cout, Cin*9), row = phase*Cout + co

    # --- single Pallas invocation (whole arrays in VMEM; ~70 KiB total here) ------------
    # TODO(synk): for large H*W (or large per-chip N on v7x) tile the lane axis with a grid
    # and a cross-tile two-pass norm, budgeting against v7x's 64 MiB VMEM.
    flops = 2 * (4 * Cout) * CIN9 * (N * HW)
    bytes_accessed = 2 * (P.size + Wblk.size + 4 * Cout * N * HW)   # bf16 in / bf16 out
    out_p = pl.pallas_call(
        _make_kernel(N, HW, Cout, float(eps)),
        out_shape=jax.ShapeDtypeStruct((4 * Cout, N * HW), jnp.bfloat16),
        cost_estimate=pl.CostEstimate(flops=flops, transcendentals=N * Cout,
                                      bytes_accessed=bytes_accessed),
    )(P, Wblk)

    # Depth-to-space (pixel shuffle) of the bf16 output, cast to f32 at the very end.
    o = out_p.reshape(2, 2, Cout, N, H, W)                     # [ph, pw, co, n, a, b]
    o = o.transpose(3, 2, 4, 0, 5, 1)                          # [n, co, a, ph, b, pw]
    return o.reshape(N, Cout, 2 * H, 2 * W).astype(jnp.float32)


def _reference(x, w_t, bias, *, stride=2, padding=1, operand_dtype=jnp.float32):
    """Pure-JAX reference (lax conv with lhs_dilation) for the full module, including bias.
    operand_dtype lets us mirror the kernel's bf16 MXU-operand quantization."""
    Cin, Cout, K, _ = w_t.shape
    w_conv = jnp.transpose(w_t[:, :, ::-1, ::-1], (1, 0, 2, 3))
    pad = K - 1 - padding
    y = lax.conv_general_dilated(
        x.astype(operand_dtype), w_conv.astype(operand_dtype),
        window_strides=(1, 1), padding=[(pad, pad), (pad, pad)],
        lhs_dilation=(stride, stride),
        dimension_numbers=("NCHW", "OIHW", "NCHW"),
        preferred_element_type=jnp.float32)
    y = y + bias.reshape(1, Cout, 1, 1).astype(jnp.float32)
    mean = jnp.mean(y, axis=(2, 3), keepdims=True)
    var = jnp.mean((y - mean) ** 2, axis=(2, 3), keepdims=True)
    y = (y - mean) * lax.rsqrt(var + EPS)
    return jnp.maximum(y, 0.0)


if __name__ == "__main__":
    # module config: input_channels=4, output_channels=8, kernel_size=4, stride=2, padding=1,
    # activation='ReLU', norm='instance', bias=True
    N, Cin, Cout, H, W, K = 2, 4, 8, 16, 16, 4

    key = jax.random.PRNGKey(0)
    kx, kw, kb = jax.random.split(key, 3)
    x = jax.random.normal(kx, (N, Cin, H, W), dtype=jnp.float32)
    w_t = 0.1 * jax.random.normal(kw, (Cin, Cout, K, K), dtype=jnp.float32)   # (Cin, Cout, K, K)
    bias = 0.1 * jax.random.normal(kb, (Cout,), dtype=jnp.float32)

    fwd = jax.jit(sf_conv_transpose2d_block)
    out = jax.block_until_ready(fwd(x, w_t, bias))
    assert out.shape == (N, Cout, 2 * H, 2 * W), out.shape

    # Check vs. a reference with the same bf16 conv-operand quantization (tolerance also covers
    # the bf16 output store); this proves indexing/phase packing and the bias cancellation.
    ref_bf16 = _reference(x, w_t, bias, operand_dtype=jnp.bfloat16)
    err = float(jnp.max(jnp.abs(out - ref_bf16)))
    assert jnp.allclose(out, ref_bf16, atol=2.5e-2, rtol=2.5e-2), err

    # Loose sanity check vs. the pure-f32 module semantics (deviation bounded by bf16 rounding).
    ref_f32 = _reference(x, w_t, bias)
    err32 = float(jnp.max(jnp.abs(out - ref_f32)))
    assert jnp.allclose(out, ref_f32, atol=1.5e-1, rtol=1.5e-1), err32

    print("KERNEL_OK")
</pallas_src>

<mosaic_0001>
module attributes {stable_mosaic.version = 11 : i64} {
  func.func @kernel(%arg0: memref<36x512xbf16, #tpu.memory_space<vmem>>, %arg1: memref<32x36xbf16, #tpu.memory_space<vmem>>, %arg2: memref<32x512xbf16, #tpu.memory_space<vmem>>) attributes {dimension_semantics = [], scalar_prefetch = 0 : i64, scratch_operands = 0 : i64, tpu.core_type = #tpu.core_type<tc>} {
    %c0 = arith.constant 0 : index
    %c0_0 = arith.constant 0 : index
    %0 = vector.load %arg1[%c0, %c0_0] : memref<32x36xbf16, #tpu.memory_space<vmem>>, vector<32x36xbf16>
    %c0_1 = arith.constant 0 : index
    %c0_2 = arith.constant 0 : index
    %1 = vector.load %arg0[%c0_1, %c0_2] : memref<36x512xbf16, #tpu.memory_space<vmem>>, vector<36x512xbf16>
    %cst = arith.constant dense<0.000000e+00> : vector<32x512xf32>
    %2 = tpu.matmul %0, %1, %cst {dimension_numbers = #tpu.dot_dimension_numbers<[1], [0], [0], [1], [0, 0, 1, 1], [], []>} : vector<32x36xbf16>, vector<36x512xbf16>, vector<32x512xf32> -> vector<32x512xf32>
    %3 = vector.shape_cast %2 : vector<32x512xf32> to vector<4x8x512xf32>
    %4 = vector.extract_strided_slice %3 {offsets = [0, 0, 0], sizes = [4, 8, 256], strides = [1, 1, 1]} : vector<4x8x512xf32> to vector<4x8x256xf32>
    %cst_3 = arith.constant dense<0.000000e+00> : vector<8x256xf32>
    %5 = vector.multi_reduction <add>, %4, %cst_3 [0] : vector<4x8x256xf32> to vector<8x256xf32>
    %cst_4 = arith.constant dense<0.000000e+00> : vector<8xf32>
    %6 = vector.multi_reduction <add>, %5, %cst_4 [1] : vector<8x256xf32> to vector<8xf32>
    %7 = vector.shape_cast %6 : vector<8xf32> to vector<8x1xf32>
    %cst_5 = arith.constant 9.765625E-4 : f32
    %8 = vector.broadcast %cst_5 : f32 to vector<8x1xf32>
    %9 = arith.mulf %7, %8 : vector<8x1xf32>
    %10 = vector.shape_cast %9 : vector<8x1xf32> to vector<1x8x1xf32>
    %11 = vector.broadcast %10 : vector<1x8x1xf32> to vector<4x8x256xf32>
    %12 = arith.subf %4, %11 : vector<4x8x256xf32>
    %13 = arith.mulf %12, %12 : vector<4x8x256xf32>
    %cst_6 = arith.constant dense<0.000000e+00> : vector<8x256xf32>
    %14 = vector.multi_reduction <add>, %13, %cst_6 [0] : vector<4x8x256xf32> to vector<8x256xf32>
    %cst_7 = arith.constant dense<0.000000e+00> : vector<8xf32>
    %15 = vector.multi_reduction <add>, %14, %cst_7 [1] : vector<8x256xf32> to vector<8xf32>
    %16 = vector.shape_cast %15 : vector<8xf32> to vector<8x1xf32>
    %cst_8 = arith.constant 9.765625E-4 : f32
    %17 = vector.broadcast %cst_8 : f32 to vector<8x1xf32>
    %18 = arith.mulf %16, %17 : vector<8x1xf32>
    %cst_9 = arith.constant 9.99999974E-6 : f32
    %19 = vector.broadcast %cst_9 : f32 to vector<8x1xf32>
    %20 = arith.addf %18, %19 : vector<8x1xf32>
    %21 = math.rsqrt %20 : vector<8x1xf32>
    %22 = vector.shape_cast %21 : vector<8x1xf32> to vector<1x8x1xf32>
    %23 = vector.broadcast %22 : vector<1x8x1xf32> to vector<4x8x256xf32>
    %24 = arith.mulf %12, %23 : vector<4x8x256xf32>
    %cst_10 = arith.constant 0.000000e+00 : f32
    %25 = vector.broadcast %cst_10 : f32 to vector<4x8x256xf32>
    %26 = arith.maximumf %24, %25 : vector<4x8x256xf32>
    %27 = vector.shape_cast %26 : vector<4x8x256xf32> to vector<32x256xf32>
    %28 = arith.truncf %27 : vector<32x256xf32> to vector<32x256xbf16>
    %c0_11 = arith.constant 0 : index
    %c0_12 = arith.constant 0 : index
    %29 = vector.load %arg2[%c0_11, %c0_12] : memref<32x512xbf16, #tpu.memory_space<vmem>>, vector<32x256xbf16>
    tpu.vector_store %arg2[%c0_11, %c0_12], %28 {strides = array<i32>} : memref<32x512xbf16, #tpu.memory_space<vmem>>, vector<32x256xbf16>,
    %30 = vector.extract_strided_slice %3 {offsets = [0, 0, 256], sizes = [4, 8, 256], strides = [1, 1, 1]} : vector<4x8x512xf32> to vector<4x8x256xf32>
    %cst_13 = arith.constant dense<0.000000e+00> : vector<8x256xf32>
    %31 = vector.multi_reduction <add>, %30, %cst_13 [0] : vector<4x8x256xf32> to vector<8x256xf32>
    %cst_14 = arith.constant dense<0.000000e+00> : vector<8xf32>
    %32 = vector.multi_reduction <add>, %31, %cst_14 [1] : vector<8x256xf32> to vector<8xf32>
    %33 = vector.shape_cast %32 : vector<8xf32> to vector<8x1xf32>
    %cst_15 = arith.constant 9.765625E-4 : f32
    %34 = vector.broadcast %cst_15 : f32 to vector<8x1xf32>
    %35 = arith.mulf %33, %34 : vector<8x1xf32>
    %36 = vector.shape_cast %35 : vector<8x1xf32> to vector<1x8x1xf32>
    %37 = vector.broadcast %36 : vector<1x8x1xf32> to vector<4x8x256xf32>
    %38 = arith.subf %30, %37 : vector<4x8x256xf32>
    %39 = arith.mulf %38, %38 : vector<4x8x256xf32>
    %cst_16 = arith.constant dense<0.000000e+00> : vector<8x256xf32>
    %40 = vector.multi_reduction <add>, %39, %cst_16 [0] : vector<4x8x256xf32> to vector<8x256xf32>
    %cst_17 = arith.constant dense<0.000000e+00> : vector<8xf32>
    %41 = vector.multi_reduction <add>, %40, %cst_17 [1] : vector<8x256xf32> to vector<8xf32>
    %42 = vector.shape_cast %41 : vector<8xf32> to vector<8x1xf32>
    %cst_18 = arith.constant 9.765625E-4 : f32
    %43 = vector.broadcast %cst_18 : f32 to vector<8x1xf32>
    %44 = arith.mulf %42, %43 : vector<8x1xf32>
    %cst_19 = arith.constant 9.99999974E-6 : f32
    %45 = vector.broadcast %cst_19 : f32 to vector<8x1xf32>
    %46 = arith.addf %44, %45 : vector<8x1xf32>
    %47 = math.rsqrt %46 : vector<8x1xf32>
    %48 = vector.shape_cast %47 : vector<8x1xf32> to vector<1x8x1xf32>
    %49 = vector.broadcast %48 : vector<1x8x1xf32> to vector<4x8x256xf32>
    %50 = arith.mulf %38, %49 : vector<4x8x256xf32>
    %cst_20 = arith.constant 0.000000e+00 : f32
    %51 = vector.broadcast %cst_20 : f32 to vector<4x8x256xf32>
    %52 = arith.maximumf %50, %51 : vector<4x8x256xf32>
    %53 = vector.shape_cast %52 : vector<4x8x256xf32> to vector<32x256xf32>
    %54 = arith.truncf %53 : vector<32x256xf32> to vector<32x256xbf16>
    %c0_21 = arith.constant 0 : index
    %c256 = arith.constant 256 : index
    %55 = vector.load %arg2[%c0_21, %c256] : memref<32x512xbf16, #tpu.memory_space<vmem>>, vector<32x256xbf16>
    tpu.vector_store %arg2[%c0_21, %c256], %54 {strides = array<i32>} : memref<32x512xbf16, #tpu.memory_space<vmem>>, vector<32x256xbf16>,
    return
  }
}

</mosaic_0001>

<bundles_post_ra>
// kernel: reverse.2
= control target key start
LH: loop header
LB: loop body
LE: loop exit
PB: predicated region body
PF: predicated region fallthrough
CT: control target
= control target key end

     0   :  { %v100_v8 = vld [vmem:[#allocation1 + $0xe] sm:$0x1]  ;;  %v132_v10 = vld [vmem:[#allocation1 + $0xc] sm:$0x1]  ;;  %v164_v11 = vld [vmem:[#allocation1 + $0xa] sm:$0x1]  ;;  %v334_v33 = vlaneseq  ;;  %s620_s0 = inlined_call_operand.vmem [shape: bf16[4,8,2,2], index: 0, kind: input, shape index: {}]   ;;  %s621_s1 = inlined_call_operand.vmem [shape: bf16[4,8,2,2], index: 1, kind: output, shape index: {}]  }
   0x1   :  { %v18_v0 = vld [vmem:[%s620_s0] sm:$0x1]  ;;  %v20_v1 = vld [vmem:[%s620_s0 + $0x1] sm:$0x1]  ;;  %v22_v2 = vld [vmem:[%s620_s0 + $0x2] sm:$0x1]  ;;  %v101_v9 = vunpack.c.l.bf16 %v100_v8  ;;  %v133_v13 = vunpack.c.l.bf16 %v132_v10  ;;  %v165_v14 = vunpack.c.l.bf16 %v164_v11 }
   0x2   :  { %19 = vst [vmem:[#allocation1 + $0x1] sm:$0x1] %v18_v0  ;;  %21 = vst [vmem:[#allocation1 + $0x3] sm:$0x1] %v20_v1  ;;  %v24_v3 = vld [vmem:[%s620_s0 + $0x3] sm:$0x1] }
   0x3   :  { %23 = vst [vmem:[#allocation1 + $0x5] sm:$0x1] %v22_v2  ;;  %v26_v4 = vld [vmem:[%s620_s0 + $0x4] sm:$0x1]  ;;  %v28_v5 = vld [vmem:[%s620_s0 + $0x5] sm:$0x1] }
   0x4   :  { %25 = vst [vmem:[#allocation1 + $0x7] sm:$0x1] %v24_v3  ;;  %27 = vst [vmem:[#allocation1 + $0x9] sm:$0x1] %v26_v4  ;;  %v30_v6 = vld [vmem:[%s620_s0 + $0x6] sm:$0x1] }
   0x5   :  { %29 = vst [vmem:[#allocation1 + $0xb] sm:$0x1] %v28_v5  ;;  %v32_v7 = vld [vmem:[%s620_s0 + $0x7] sm:$0x1]  ;;  %31 = vst [vmem:[#allocation1 + $0xd] sm:$0x1] %v30_v6 }
   0x6   :  { %33 = vst [vmem:[#allocation1 + $0xf] sm:$0x1] %v32_v7  ;;  %v196_v12 = vld [vmem:[#allocation1 + $0x8] sm:$0x1]  ;;  %v228_v16 = vld [vmem:[#allocation1 + $0x6] sm:$0x1] }
   0x7   :  { %v197_v15 = vunpack.c.l.bf16 %v196_v12  ;;  %v260_v17 = vld [vmem:[#allocation1 + $0x4] sm:$0x1]  ;;  %v292_v18 = vld [vmem:[#allocation1 + $0x2] sm:$0x1]  ;;  %104 = vst [vmem:[#allocation0 + $0x70] sm:$0x3] %v101_v9  ;;  %v229_v19 = vunpack.c.l.bf16 %v228_v16 }
   0x8   :  { %v261_v20 = vunpack.c.l.bf16 %v260_v17  ;;  %v293_v21 = vunpack.c.l.bf16 %v292_v18  ;;  %v321_v22 = vld [vmem:[#allocation1] sm:$0x1]  ;;  %136 = vst [vmem:[#allocation0 + $0x60] sm:$0x3] %v133_v13  ;;  %168 = vst [vmem:[#allocation0 + $0x50] sm:$0x3] %v165_v14 }
   0x9   :  { %200 = vst [vmem:[#allocation0 + $0x40] sm:$0x3] %v197_v15  ;;  %v322_v23 = vunpack.c.l.bf16 %v321_v22  ;;  %232 = vst [vmem:[#allocation0 + $0x30] sm:$0x3] %v229_v19  ;;  %v276_v25 = vld [vmem:[#allocation1 + $0x3] sm:$0x1] }
   0xa   :  { %264 = vst [vmem:[#allocation0 + $0x20] sm:$0x3] %v261_v20  ;;  %296 = vst [vmem:[#allocation0 + $0x10] sm:$0x3] %v293_v21  ;;  %v244_v24 = vld [vmem:[#allocation1 + $0x5] sm:$0x1]  ;;  %v277_v31 = vunpack.c.l.bf16 %v276_v25 }
   0xb   :  { %v307_v26 = vld [vmem:[#allocation1 + $0x1] sm:$0x1]  ;;  %324 = vst [vmem:[#allocation0] sm:$0x3] %v322_v23  ;;  %v180_v28 = vld [vmem:[#allocation1 + $0x9] sm:$0x1]  ;;  %v245_v30 = vunpack.c.l.bf16 %v244_v24 }
   0xc   :  { %v148_v27 = vld [vmem:[#allocation1 + $0xb] sm:$0x1]  ;;  %v212_v29 = vld [vmem:[#allocation1 + $0x7] sm:$0x1]  ;;  %v308_v32 = vunpack.c.l.bf16 %v307_v26  ;;  %v116_v35 = vld [vmem:[#allocation1 + $0xd] sm:$0x1]  ;;  %v181_v37 = vunpack.c.l.bf16 %v180_v28 }
   0xd   :  { %v84_v34 = vld [vmem:[#allocation1 + $0xf] sm:$0x1]  ;;  %v149_v36 = vunpack.c.l.bf16 %v148_v27  ;;  %v213_v38 = vunpack.c.l.bf16 %v212_v29  ;;  %v117_v40 = vunpack.c.l.bf16 %v116_v35  ;;  %248 = vst [vmem:[#allocation0 + $0x28] sm:$0x3] %v245_v30  ;;  %280 = vst [vmem:[#allocation0 + $0x18] sm:$0x3] %v277_v31 }
   0xe   :  { %v85_v39 = vunpack.c.l.bf16 %v84_v34  ;;  %311 = vst [vmem:[#allocation0 + $0x8] sm:$0x3] %v308_v32  ;;  %184 = vst [vmem:[#allocation0 + $0x48] sm:$0x3] %v181_v37  ;;  %v410_v41 = vld [vmem:[#allocation0 + $0x77] ss:$-1 sm:$0xff] }
   0xf   :  { %152 = vst [vmem:[#allocation0 + $0x58] sm:$0x3] %v149_v36  ;;  %216 = vst [vmem:[#allocation0 + $0x38] sm:$0x3] %v213_v38  ;;  %v335_v42 = vshrl.u32 %v334_v33, 7  ;;  %v411_v45 = vrot.slane %v410_v41, 6 }
  0x10   :  { %88 = vst [vmem:[#allocation0 + $0x78] sm:$0x3] %v85_v39  ;;  %120 = vst [vmem:[#allocation0 + $0x68] sm:$0x3] %v117_v40  ;;  %v382_v43 = vld [vmem:[#allocation0 + $0x57] ss:$-1 sm:$0xff] }
  0x11   :  { %v396_v44 = vld [vmem:[#allocation0 + $0x47] ss:$-1 sm:$0xff]  ;;  %v327_v46 = vld [vmem:[#allocation0 + $0x17] ss:$-1 sm:$0xff]  ;;  %v383_v53 = vrot.slane %v382_v43, 6  ;;  %412 = vst [vmem:[#allocation2 + $0x30] sm:$0xff] %v411_v45 }
  0x12   :  { %v354_v47 = vld [vmem:[#allocation0 + $0x37] ss:$-1 sm:$0xff]  ;;  %v368_v48 = vld [vmem:[#allocation0 + $0x27] ss:$-1 sm:$0xff]  ;;  %v328_v49 = vrot.slane %v327_v46, 6  ;;  %v397_v55 = vrot.slane %v396_v44, 6 }
  0x13   :  { %v340_v50 = vld [vmem:[#allocation0 + $0x7] ss:$-1 sm:$0xff]  ;;  %v355_v51 = vrot.slane %v354_v47, 6  ;;  %v369_v52 = vrot.slane %v368_v48, 6  ;;  %vm336_vm0 = vcmp.lt.s32.totalorder %v335_v42, 2  ;;  %384 = vst [vmem:[#allocation2 + $0x20] sm:$0xff] %v383_v53 }
  0x14   :  { %v341_v54 = vrot.slane %v340_v50, 6  ;;  %v424_v56 = vld [vmem:[#allocation0 + $0x67] ss:$-1 sm:$0xff]  ;;  %329 = vst [vmem:[#allocation2] sm:$0xff] %v328_v49  ;;  %v332_v58 = vld [vmem:[#allocation0 + $0x1f] ss:$-1 sm:$0xff] }
  0x15   :  { %356 = vst [vmem:[#allocation2 + $0x10] sm:$0xff] %v355_v51  ;;  %370 = vst [vmem:[#allocation2 + $0x18] sm:$0xff] %v369_v52  ;;  %v425_v57 = vrot.slane %v424_v56, 6  ;;  %v345_v59 = vld [vmem:[#allocation0 + $0xf] ss:$-1 sm:$0xff]  ;;  %v333_v61 = vrot.slane %v332_v58, 6 }
  0x16   :  { %342 = vst [vmem:[#allocation2 + $0x8] sm:$0xff] %v341_v54  ;;  %v373_v60 = vld [vmem:[#allocation0 + $0x2f] ss:$-1 sm:$0xff]  ;;  %398 = vst [vmem:[#allocation2 + $0x28] sm:$0xff] %v397_v55  ;;  %v346_v62 = vrot.slane %v345_v59, 6  ;;  %v574_v13 = vmov 0.0  }
  0x17   :  { %v359_v63 = vld [vmem:[#allocation0 + $0x3f] ss:$-1 sm:$0xff]  ;;  %v374_v0 = vrot.slane %v373_v60, 6  ;;  %426 = vst [vmem:[#allocation2 + $0x38] sm:$0xff] %v425_v57  ;;  %v401_v3 = vld [vmem:[#allocation0 + $0x4f] ss:$-1 sm:$0xff] }
  0x18   :  { %v360_v1 = vrot.slane %v359_v63, 6  ;;  %v387_v2 = vld [vmem:[#allocation0 + $0x5f] ss:$-1 sm:$0xff]  ;;  %337 = vst.msk [vmem:[#allocation2] sm:$0xff] %vm336_vm0, %v333_v61  ;;  %350 = vst.msk [vmem:[#allocation2 + $0x8] sm:$0xff] %vm336_vm0, %v346_v62  ;;  %v402_v5 = vrot.slane %v401_v3, 6 }
  0x19   :  { %378 = vst.msk [vmem:[#allocation2 + $0x18] sm:$0xff] %vm336_vm0, %v374_v0  ;;  %v388_v4 = vrot.slane %v387_v2, 6  ;;  %v415_v6 = vld [vmem:[#allocation0 + $0x7f] ss:$-1 sm:$0xff]  ;;  %v429_v7 = vld [vmem:[#allocation0 + $0x6f] ss:$-1 sm:$0xff] }
  0x1a   :  { %364 = vst.msk [vmem:[#allocation2 + $0x10] sm:$0xff] %vm336_vm0, %v360_v1  ;;  %v416_v8 = vrot.slane %v415_v6, 6  ;;  %v430_v9 = vrot.slane %v429_v7, 6  ;;  %406 = vst.msk [vmem:[#allocation2 + $0x28] sm:$0xff] %vm336_vm0, %v402_v5 }
  0x1b   :  { %392 = vst.msk [vmem:[#allocation2 + $0x20] sm:$0xff] %vm336_vm0, %v388_v4 }
  0x1c   :  { %420 = vst.msk [vmem:[#allocation2 + $0x30] sm:$0xff] %vm336_vm0, %v416_v8  ;;  %434 = vst.msk [vmem:[#allocation2 + $0x38] sm:$0xff] %vm336_vm0, %v430_v9 }
  0x1f   :  { %v439_v10 = vld [vmem:[#allocation2] sm:$0x3]  ;;  %v444_v11 = vld [vmem:[#allocation2 + $0x8] sm:$0x3] }
  0x20   :  { %v457_v12 = vld [vmem:[#allocation2 + $0x18] sm:$0x3]  ;;  %v440_v14 = vpack.c.bf16 %v574_v13, %v439_v10  ;;  %v445_v15 = vpack.c.bf16 %v574_v13, %v444_v11 }
  0x21   :  { %v450_v16 = vld [vmem:[#allocation2 + $0x10] sm:$0x3]  ;;  %v458_v17 = vpack.c.bf16 %v574_v13, %v457_v12  ;;  %v471_v20 = vld [vmem:[#allocation2 + $0x28] sm:$0x3] }
  0x22   :  { %v451_v18 = vpack.c.bf16 %v574_v13, %v450_v16  ;;  %v464_v19 = vld [vmem:[#allocation2 + $0x20] sm:$0x3]  ;;  %442 = vst [vmem:[#allocation3] sm:$0x1] %v440_v14  ;;  %448 = vst [vmem:[#allocation3 + $0x1] sm:$0x1] %v445_v15  ;;  %v472_v22 = vpack.c.bf16 %v574_v13, %v471_v20 }
  0x23   :  { %462 = vst [vmem:[#allocation3 + $0x3] sm:$0x1] %v458_v17  ;;  %v465_v21 = vpack.c.bf16 %v574_v13, %v464_v19  ;;  %v478_v23 = vld [vmem:[#allocation2 + $0x30] sm:$0x3]  ;;  %v485_v24 = vld [vmem:[#allocation2 + $0x38] sm:$0x3] }
  0x24   :  { %455 = vst [vmem:[#allocation3 + $0x2] sm:$0x1] %v451_v18  ;;  %v479_v25 = vpack.c.bf16 %v574_v13, %v478_v23  ;;  %v486_v26 = vpack.c.bf16 %v574_v13, %v485_v24  ;;  %476 = vst [vmem:[#allocation3 + $0x5] sm:$0x1] %v472_v22 }
  0x25   :  { %469 = vst [vmem:[#allocation3 + $0x4] sm:$0x1] %v465_v21 }
  0x26   :  { %483 = vst [vmem:[#allocation3 + $0x6] sm:$0x1] %v479_v25  ;;  %490 = vst [vmem:[#allocation3 + $0x7] sm:$0x1] %v486_v26 }
  0x2d   :  { %v518_v27 = vld [vmem:[#allocation3] sm:$0xff] }
  0x2e   :  { %519 = vst [vmem:[%s621_s1] sm:$0xff] %v518_v27 }

// kernel: sf_conv_transpose2d_block.1
= control target key start
LH: loop header
LB: loop body
LE: loop exit
PB: predicated region body
PF: predicated region fallthrough
CT: control target
= control target key end

     0   :  { %v439_v1 = vmov 0   ;;  %vm93_vm0 = vcmask 1041408   ;;  %vm86_vm1 = vcmask 293888   ;;  %s549_s0 = inlined_call_operand.vmem [shape: bf16[36,512], index: 0, kind: input, shape index: {}]   ;;  %s550_s1 = inlined_call_operand.vmem [shape: bf16[32,36], index: 1, kind: input, shape index: {}]   ;;  %s551_s2 = inlined_call_operand.vmem [shape: bf16[32,512], index: 2, kind: output, shape index: {}]  }
   0x1   :  { %v417_v0 = vld [vmem:[%s549_s0 + $0x4] ss:$16 sps:$4 sm:$0xff]   ;;  %138 = vmatprep.mubr.bf16.mxu0 %v439_v1  ;;  %191 = vmatprep.mubr.bf16.mxu1 %v439_v1  ;;  %v419_v2 = vld [vmem:[%s549_s0 + $0xc] ss:$16 sps:$4 sm:$0xff]   ;;  %v421_v3 = vld [vmem:[%s549_s0] ss:$16 sps:$4 sm:$0xff]  }
   0x2   :  { %106 = vmatprep.subr.bf16.mxu0 %v417_v0  ;;  %v422_v4 = vld [vmem:[%s549_s0 + $0x8] ss:$16 sps:$4 sm:$0xff]   ;;  %159 = vmatprep.subr.bf16.mxu1 %v419_v2  ;;  %v423_v5 = vld [vmem:[%s549_s0 + $0x24] ss:$16 sps:$4 sm:$0xff]   ;;  %v425_v6 = vld [vmem:[%s549_s0 + $0x2c] ss:$16 sps:$4 sm:$0xff]  }
   0x3   :  { %107 = vmatpush1.bf16.msra.mxu0 %v421_v3  ;;  %160 = vmatpush1.bf16.msra.mxu1 %v422_v4  ;;  %v427_v7 = vld [vmem:[%s549_s0 + $0x20] ss:$16 sps:$4 sm:$0xff]   ;;  %v428_v8 = vld [vmem:[%s549_s0 + $0x28] ss:$16 sps:$4 sm:$0xff]  }
   0x4   :  { %108 = vmatprep.subr.bf16.mxu0 %v423_v5  ;;  %v24_v9 = vld [vmem:[%s549_s0 + $0x40] sm:$0x33]  ;;  %v25_v10 = vld [vmem:[%s549_s0 + $0x48] sm:$0x33]  ;;  %161 = vmatprep.subr.bf16.mxu1 %v425_v6 }
   0x5   :  { %v391_v11 = vcombine.high %v24_v9, %v24_v9  ;;  %v393_v12 = vcombine.high %v25_v10, %v25_v10  ;;  %v390_v13 = vcombine.low %v24_v9, %v24_v9  ;;  %v392_v14 = vcombine.low %v25_v10, %v25_v10  ;;  %v433_v17 = vld [vmem:[%s550_s1] sm:$0xff]   ;;  %v434_v18 = vld [vmem:[%s550_s1 + $0x8] sm:$0xff]  }
   0x7   :  { %109 = vmatpush1.bf16.msra.mxu0 %v427_v7  ;;  %162 = vmatpush1.bf16.msra.mxu1 %v428_v8  ;;  %v95_v15 = vsel %vm93_vm0, %v390_v13, 0  ;;  %v101_v16 = vsel %vm93_vm0, %v392_v14, 0 }
   0x8   :  { %394 = vmatprep.subr.msk.bf16.mxu0 %vm93_vm0, %v391_v11  ;;  %397 = vmatprep.subr.msk.bf16.mxu1 %vm93_vm0, %v393_v12 }
   0xb   :  { %111 = vmatpush1.bf16.msra.mxu0 %v95_v15  ;;  %164 = vmatpush1.bf16.msra.mxu1 %v101_v16 }
   0xe   :  { %395 = vmatmul.mubr.msk.bf16.vlgmr.msra.gmra.mrb[0].mxu0 %vm86_vm1, %v433_v17  ;;  %398 = vmatmul.mubr.msk.bf16.vlgmr.msra.gmra.mrb[0].mxu1 %vm86_vm1, %v433_v17 }
   0xf   :  { %148 = vmatprep.mubr.bf16.mxu0 %v439_v1  ;;  %201 = vmatprep.mubr.bf16.mxu1 %v439_v1 }
  0x16   :  { %396 = vmatmul.mubr.msk.bf16.gmra.mrb[4].mxu0 %vm86_vm1, %v434_v18  ;;  %399 = vmatmul.mubr.msk.bf16.gmra.mrb[4].mxu1 %vm86_vm1, %v434_v18 }
  0xe1   :  { %v140_v19 = vpop.f32.mrb[0].mxu0  ;;  %v193_v20 = vpop.f32.mrb[0].mxu1 }
  0xe2   :  { %v142_v21 = vpop.f32.mrb[1].mxu0  ;;  %v195_v22 = vpop.f32.mrb[1].mxu1 }
  0xe3   :  { %v144_v23 = vpop.f32.mrb[2].mxu0  ;;  %v197_v24 = vpop.f32.mrb[2].mxu1 }
  0xe4   :  { %v212_v25 = vadd.f32 %v144_v23, %v140_v19  ;;  %v146_v26 = vpop.f32.mrb[3].mxu0  ;;  %v294_v27 = vadd.f32 %v197_v24, %v193_v20  ;;  %v199_v28 = vpop.f32.mrb[3].mxu1 }
  0xe5   :  { %v215_v29 = vadd.f32 %v146_v26, %v142_v21  ;;  %v297_v30 = vadd.f32 %v199_v28, %v195_v22 }
  0xe9   :  { %v150_v31 = vpop.f32.mrb[4].mxu0  ;;  %v203_v32 = vpop.f32.mrb[4].mxu1 }
  0xea   :  { %v213_v33 = vadd.f32 %v212_v25, %v150_v31  ;;  %v295_v34 = vadd.f32 %v294_v27, %v203_v32  ;;  %v152_v35 = vpop.f32.mrb[5].mxu0  ;;  %v205_v36 = vpop.f32.mrb[5].mxu1 }
  0xeb   :  { %v216_v37 = vadd.f32 %v215_v29, %v152_v35  ;;  %v298_v38 = vadd.f32 %v297_v30, %v205_v36  ;;  %v154_v39 = vpop.f32.mrb[6].mxu0  ;;  %v207_v40 = vpop.f32.mrb[6].mxu1 }
  0xec   :  { %v214_v41 = vadd.f32 %v213_v33, %v154_v39  ;;  %v296_v42 = vadd.f32 %v295_v34, %v207_v40  ;;  %v156_v43 = vpop.f32.mrb[7].mxu0  ;;  %v209_v44 = vpop.f32.mrb[7].mxu1 }
  0xed   :  { %v217_v45 = vadd.f32 %v216_v37, %v156_v43  ;;  %v299_v46 = vadd.f32 %v298_v38, %v209_v44 }
  0xef   :  { %v218_v47 = vadd.f32 %v217_v45, %v214_v41  ;;  %v300_v48 = vadd.f32 %v299_v46, %v296_v42 }
  0xf1   :  { %219 = vadd.xlane.f32.xlu0 %v218_v47 }
  0xf5   :  { %301 = vadd.xlane.f32.xlu0 %v300_v48 }
 0x17e   :  { %v220_v49 = vpop.xlane.xlu0 %219 }
 0x17f   :  { %v221_v50 = vmul.f32 0.0009765625, %v220_v49 }
 0x181   :  { %v222_v51 = vsub.f32 %v140_v19, %v221_v50  ;;  %v223_v52 = vsub.f32 %v142_v21, %v221_v50  ;;  %v224_v53 = vsub.f32 %v144_v23, %v221_v50  ;;  %v225_v54 = vsub.f32 %v146_v26, %v221_v50 }
 0x182   :  { %v302_v55 = vpop.xlane.xlu0 %301  ;;  %v226_v56 = vsub.f32 %v150_v31, %v221_v50  ;;  %v227_v57 = vsub.f32 %v152_v35, %v221_v50  ;;  %v228_v58 = vsub.f32 %v154_v39, %v221_v50  ;;  %v229_v59 = vsub.f32 %v156_v43, %v221_v50 }
 0x183   :  { %v303_v60 = vmul.f32 0.0009765625, %v302_v55  ;;  %v230_v61 = vmul.f32 %v222_v51, %v222_v51  ;;  %v231_v62 = vmul.f32 %v223_v52, %v223_v52  ;;  %v232_v63 = vmul.f32 %v224_v53, %v224_v53 }
 0x184   :  { %v233_v0 = vmul.f32 %v225_v54, %v225_v54  ;;  %v234_v1 = vmul.f32 %v226_v56, %v226_v56  ;;  %v235_v2 = vmul.f32 %v227_v57, %v227_v57  ;;  %v236_v3 = vmul.f32 %v228_v58, %v228_v58 }
 0x185   :  { %v238_v4 = vadd.f32 %v232_v63, %v230_v61  ;;  %v495_v5 = vsub.f32 %v193_v20, %v303_v60  ;;  %v497_v6 = vsub.f32 %v195_v22, %v303_v60  ;;  %v499_v8 = vsub.f32 %v197_v24, %v303_v60 }
 0x186   :  { %v241_v7 = vadd.f32 %v233_v0, %v231_v62  ;;  %v501_v9 = vsub.f32 %v199_v28, %v303_v60  ;;  %v503_v10 = vsub.f32 %v203_v32, %v303_v60  ;;  %v237_v11 = vmul.f32 %v229_v59, %v229_v59 }
 0x187   :  { %v239_v12 = vadd.f32 %v238_v4, %v234_v1  ;;  %v309_v13 = vsub.f32 %v205_v36, %v303_v60  ;;  %v505_v14 = vsub.f32 %v207_v40, %v303_v60  ;;  %v312_v16 = vmul.f32 %v495_v5, %v495_v5 }
 0x188   :  { %v242_v15 = vadd.f32 %v241_v7, %v235_v2  ;;  %v313_v17 = vmul.f32 %v497_v6, %v497_v6  ;;  %v314_v18 = vmul.f32 %v499_v8, %v499_v8  ;;  %v311_v20 = vsub.f32 %v209_v44, %v303_v60 }
 0x189   :  { %v240_v19 = vadd.f32 %v239_v12, %v236_v3  ;;  %v315_v21 = vmul.f32 %v501_v9, %v501_v9  ;;  %v316_v23 = vmul.f32 %v503_v10, %v503_v10  ;;  %v317_v25 = vmul.f32 %v309_v13, %v309_v13 }
 0x18a   :  { %v243_v22 = vadd.f32 %v242_v15, %v237_v11  ;;  %v320_v24 = vadd.f32 %v314_v18, %v312_v16  ;;  %v318_v28 = vmul.f32 %v505_v14, %v505_v14  ;;  %v319_v30 = vmul.f32 %v311_v20, %v311_v20 }
 0x18b   :  { %v323_v26 = vadd.f32 %v315_v21, %v313_v17 }
 0x18c   :  { %v244_v27 = vadd.f32 %v243_v22, %v240_v19  ;;  %v321_v29 = vadd.f32 %v320_v24, %v316_v23 }
 0x18d   :  { %v324_v31 = vadd.f32 %v323_v26, %v317_v25 }
 0x18e   :  { %245 = vadd.xlane.f32.xlu1 %v244_v27  ;;  %v322_v32 = vadd.f32 %v321_v29, %v318_v28 }
 0x18f   :  { %v325_v33 = vadd.f32 %v324_v31, %v319_v30 }
 0x191   :  { %v326_v34 = vadd.f32 %v325_v33, %v322_v32 }
 0x193   :  { %327 = vadd.xlane.f32.xlu1 %v326_v34 }
 0x21b   :  { %v246_v35 = vpop.xlane.xlu1 %245 }
 0x21c   :  { %v247_v36 = vmul.f32 0.0009765625, %v246_v35 }
 0x21e   :  { %v248_v37 = vadd.f32 1e-05, %v247_v36 }
 0x220   :  { %435 = vrsqrt.f32 %v248_v37  ;;  %v328_v38 = vpop.xlane.xlu1 %327 }
 0x221   :  { %v329_v39 = vmul.f32 0.0009765625, %v328_v38 }
 0x223   :  { %v330_v40 = vadd.f32 1e-05, %v329_v39 }
 0x225   :  { %437 = vrsqrt.f32 %v330_v40 }
 0x22a   :  { %v436_v41 = vpop.eup %435 }
 0x22b   :  { %v250_v42 = vmul.f32 %v436_v41, %v222_v51  ;;  %v251_v43 = vmul.f32 %v436_v41, %v223_v52  ;;  %v252_v44 = vmul.f32 %v436_v41, %v224_v53  ;;  %v253_v45 = vmul.f32 %v436_v41, %v225_v54 }
 0x22c   :  { %v254_v46 = vmul.f32 %v436_v41, %v226_v56  ;;  %v255_v47 = vmul.f32 %v436_v41, %v227_v57  ;;  %v256_v48 = vmul.f32 %v436_v41, %v228_v58  ;;  %v257_v49 = vmul.f32 %v436_v41, %v229_v59 }
 0x22d   :  { %v258_v50 = vmax.f32 %v250_v42, 0.0  ;;  %v259_v55 = vmax.f32 %v251_v43, 0.0  ;;  %v260_v60 = vmax.f32 %v252_v44, 0.0  ;;  %v261_v61 = vmax.f32 %v253_v45, 0.0 }
 0x22e   :  { %v262_v62 = vmax.f32 %v254_v46, 0.0  ;;  %v263_v63 = vmax.f32 %v255_v47, 0.0  ;;  %v264_v0 = vmax.f32 %v256_v48, 0.0  ;;  %v265_v1 = vmax.f32 %v257_v49, 0.0 }
 0x22f   :  { %v438_v2 = vpop.eup %437  ;;  %v408_v3 = vpack.c.bf16 %v259_v55, %v258_v50  ;;  %v409_v4 = vpack.c.bf16 %v261_v61, %v260_v60 }
 0x230   :  { %v410_v7 = vpack.c.bf16 %v263_v63, %v262_v62  ;;  %v411_v51 = vpack.c.bf16 %v265_v1, %v264_v0  ;;  %v332_v52 = vmul.f32 %v438_v2, %v495_v5  ;;  %v333_v53 = vmul.f32 %v438_v2, %v497_v6 }
 0x231   :  { %290 = vst [vmem:[%s551_s2] sm:$0xff] %v408_v3  ;;  %291 = vst [vmem:[%s551_s2 + $0x10] sm:$0xff] %v409_v4  ;;  %v334_v54 = vmul.f32 %v438_v2, %v499_v8  ;;  %v335_v56 = vmul.f32 %v438_v2, %v501_v9  ;;  %v336_v57 = vmul.f32 %v438_v2, %v503_v10 }
 0x232   :  { %v337_v58 = vmul.f32 %v438_v2, %v309_v13  ;;  %292 = vst [vmem:[%s551_s2 + $0x20] sm:$0xff] %v410_v7  ;;  %293 = vst [vmem:[%s551_s2 + $0x30] sm:$0xff] %v411_v51  ;;  %v338_v59 = vmul.f32 %v438_v2, %v505_v14  ;;  %v339_v5 = vmul.f32 %v438_v2, %v311_v20  ;;  %v340_v6 = vmax.f32 %v332_v52, 0.0 }
 0x233   :  { %v341_v11 = vmax.f32 %v333_v53, 0.0  ;;  %v342_v12 = vmax.f32 %v334_v54, 0.0  ;;  %v343_v8 = vmax.f32 %v335_v56, 0.0  ;;  %v344_v15 = vmax.f32 %v336_v57, 0.0 }
 0x234   :  { %v345_v9 = vmax.f32 %v337_v58, 0.0  ;;  %v346_v16 = vmax.f32 %v338_v59, 0.0  ;;  %v347_v10 = vmax.f32 %v339_v5, 0.0 }
 0x235   :  { %v412_v13 = vpack.c.bf16 %v341_v11, %v340_v6  ;;  %v413_v17 = vpack.c.bf16 %v343_v8, %v342_v12 }
 0x236   :  { %v414_v18 = vpack.c.bf16 %v345_v9, %v344_v15  ;;  %v415_v19 = vpack.c.bf16 %v347_v10, %v346_v16 }
 0x237   :  { %372 = vst [vmem:[%s551_s2 + $0x8] sm:$0xff] %v412_v13  ;;  %373 = vst [vmem:[%s551_s2 + $0x18] sm:$0xff] %v413_v17 }
 0x238   :  { %374 = vst [vmem:[%s551_s2 + $0x28] sm:$0xff] %v414_v18  ;;  %375 = vst [vmem:[%s551_s2 + $0x38] sm:$0xff] %v415_v19 }

</bundles_post_ra>
